<compile_context>
chip_gen: v7x
topology: tpu7x:2x2x1
jax: 0.10.0
libtpu: 0.0.40
codegen_flags: <defaults>
</compile_context>

<pallas_src>
import functools

import jax
import jax.numpy as jnp
from jax import lax
from jax.experimental import pallas as pl
from jax.experimental.pallas import tpu as pltpu

LANE = 128


def _round_up(a, m):
    return ((a + m - 1) // m) * m


def _cdiv(a, b):
    return (a + b - 1) // b


def _samepad_conv1d_kernel(x_ref, xh_ref, w_ref, b_ref, o_ref, *,
                           K, dilation, groups, cin_g, cout_g, use_mxu):
    """One (batch, L-tile) grid step.

    x_ref  : (1, C_in, TL)   body of this tile's halo window (pipelined)
    xh_ref : (1, C_in, H)    right halo block (next TL-aligned 128-wide chunk)
    w_ref  : MXU path: (C_out, K*cin_g) folded weights (k-major inner index)
             VPU path: (K, C_out, cin_g) tap-major weights
    b_ref  : (C_out, 1)      bias column
    o_ref  : (1, C_out, TL)  output tile (lane-dense store; ragged tail masked)
    """
    TL = o_ref.shape[2]
    # Assemble the halo window once: both pieces are lane-aligned so this is a
    # single cheap VMEM concat; the per-tap shifts below slice out of it.
    x_win = jnp.concatenate([x_ref[0], xh_ref[0]], axis=-1)      # (C_in, TL + H)

    for g in range(groups):                                      # static, small
        co0 = g * cout_g
        ci0 = g * cin_g
        b_col = b_ref[co0:co0 + cout_g, :].astype(jnp.float32)   # (cout_g, 1)
        if use_mxu:
            # Fold the K taps into one deep matmul per group:
            #   (cout_g, K*cin_g) @ (K*cin_g, TL)  with the N dim lane-dense.
            taps = [x_win[ci0:ci0 + cin_g, k * dilation:k * dilation + TL]
                    for k in range(K)]
            x_stack = taps[0] if K == 1 else jnp.concatenate(taps, axis=0)
            wg = w_ref[co0:co0 + cout_g, :]                      # (cout_g, K*cin_g)
            acc = jnp.dot(wg, x_stack, preferred_element_type=jnp.float32)
            acc = acc + b_col
        else:
            # Narrow channels: VPU broadcast-MAC (tiny matmuls would leave the
            # MXU mostly idle).  Accumulator starts at the bias (no epilogue).
            # TODO(synk): for very large K*cin_g*groups (e.g. depthwise convs)
            # switch the tap/channel loops to lax.fori_loop to bound live ranges.
            acc = jnp.broadcast_to(b_col, (cout_g, TL))
            for k in range(K):                                   # static taps
                lo = k * dilation
                xk = x_win[ci0:ci0 + cin_g, lo:lo + TL]          # one shift per tap
                for ci in range(cin_g):
                    w_col = w_ref[k, co0:co0 + cout_g, ci:ci + 1]    # (cout_g, 1)
                    acc = acc + w_col * xk[ci:ci + 1, :]
        # Direct per-group slice store -- no concatenate over groups.
        o_ref[0, co0:co0 + cout_g, :] = acc.astype(o_ref.dtype)


def same_pad_conv(x, weight, bias, *, kernel_size, dilation=1, groups=1, tile_l=None):
    """SamePadConv.forward.

    x      : (B, C_in, L)                 -- PyTorch NCL layout (kept end-to-end)
    weight : (C_out, C_in // groups, K)   -- PyTorch Conv1d weight layout
    bias   : (C_out,)
    returns (B, C_out, L)
    """
    B, C_in, L = x.shape
    C_out = weight.shape[0]
    K = kernel_size
    receptive_field = (K - 1) * dilation + 1
    pad = receptive_field // 2
    halo = (K - 1) * dilation
    assert C_in % groups == 0 and C_out % groups == 0
    cin_g = C_in // groups
    cout_g = C_out // groups

    dsz = jnp.dtype(x.dtype).itemsize
    use_mxu = cin_g >= 32                         # wide contraction -> MXU path

    # Halo block width: lane-aligned chunk(s) covering the receptive-field
    # overhang.  TL must be a multiple of H so the halo block index is exact.
    H = max(LANE, _round_up(max(halo, 1), LANE))

    # ---- L tile from a per-step VMEM budget (blocks are double-buffered) ----
    per_elem = dsz * (2 * C_in + 2 * C_out)           # pipelined x-body + out blocks
    per_elem += 4 * C_out + dsz * C_in                # f32 accumulator + window copy
    per_elem += dsz * (K if use_mxu else 2) * C_in    # stacked / shifted tap temps
    fixed = dsz * 2 * C_in * H + (2 << 20)            # halo blocks + weights/bias/slack
    BLOCK_BUDGET = 12 << 20                           # portable across v5e/v6e/v7x
    Lr = _round_up(L, H)
    if tile_l is not None:
        assert tile_l > 0 and tile_l % H == 0, "tile_l must be a positive multiple of the halo block"
        TL = tile_l
    else:
        TL = max(H, (BLOCK_BUDGET - fixed) // per_elem)
        TL = min(TL, 32768, Lr)
        TL = max(H, (TL // H) * H)
        # v7x has 2 TensorCores per chip: a single-batch call should still have
        # >=2 parallel grid steps along L when L is long enough.
        if B == 1 and Lr > H:
            TL = min(TL, max(H, _round_up(_cdiv(L, 2), H)))
    nT = _cdiv(L, TL)
    Lpad = nT * TL + H

    # One zero pad: left "same" padding + right padding out to the last halo block.
    xp = jnp.pad(x, ((0, 0), (0, 0), (pad, Lpad - pad - L)))

    if use_mxu:
        # (C_out, K*cin_g), inner index = k*cin_g + ci  (matches x_stack order).
        w_kernel = jnp.transpose(weight, (0, 2, 1)).reshape(C_out, K * cin_g)
        w_spec = pl.BlockSpec((C_out, K * cin_g), lambda b, j: (0, 0))         # VMEM-resident
    else:
        w_kernel = jnp.transpose(weight, (2, 0, 1))                            # (K, C_out, cin_g)
        w_spec = pl.BlockSpec((K, C_out, cin_g), lambda b, j: (0, 0, 0))       # VMEM-resident
    b_col = bias.reshape(C_out, 1)

    est_vmem = per_elem * TL + fixed
    vmem_limit = int(min(64 << 20, max(32 << 20, 2 * est_vmem)))

    kernel = functools.partial(
        _samepad_conv1d_kernel,
        K=K, dilation=dilation, groups=groups,
        cin_g=cin_g, cout_g=cout_g, use_mxu=use_mxu)

    hstep = TL // H
    out = pl.pallas_call(
        kernel,
        out_shape=jax.ShapeDtypeStruct((B, C_out, L), x.dtype),
        grid_spec=pltpu.PrefetchScalarGridSpec(
            num_scalar_prefetch=0,
            grid=(B, nT),
            in_specs=[
                pl.BlockSpec((1, C_in, TL), lambda b, j: (b, 0, j)),
                pl.BlockSpec((1, C_in, H), lambda b, j, s=hstep: (b, 0, (j + 1) * s)),
                w_spec,
                pl.BlockSpec((C_out, 1), lambda b, j: (0, 0)),                 # VMEM-resident
            ],
            out_specs=pl.BlockSpec((1, C_out, TL), lambda b, j: (b, 0, j)),
        ),
        compiler_params=pltpu.CompilerParams(
            dimension_semantics=("parallel", "parallel"),
            vmem_limit_bytes=vmem_limit),
    )(xp, xp, w_kernel, b_col)
    return out


def _reference_same_pad_conv(x_ncl, weight, bias, *, kernel_size, dilation, groups):
    """Pure-JAX reference replicating torch.nn.Conv1d + trailing-element trim."""
    receptive_field = (kernel_size - 1) * dilation + 1
    pad = receptive_field // 2
    remove = 1 if receptive_field % 2 == 0 else 0
    out = lax.conv_general_dilated(
        x_ncl, weight,
        window_strides=(1,),
        padding=[(pad, pad)],
        rhs_dilation=(dilation,),
        dimension_numbers=("NCH", "OIH", "NCH"),
        feature_group_count=groups,
        precision=lax.Precision.HIGHEST)
    out = out + bias[None, :, None]
    if remove > 0:
        out = out[:, :, :-remove]
    return out


if __name__ == "__main__":
    key = jax.random.PRNGKey(0)

    def run_case(cid, B, L, cin, cout, K, dilation, groups, tile_l=None,
                 atol=1e-5, rtol=1e-5):
        kx, kw, kb = jax.random.split(jax.random.fold_in(key, cid), 3)
        x = jax.random.normal(kx, (B, cin, L), dtype=jnp.float32)
        w = jax.random.normal(kw, (cout, cin // groups, K), dtype=jnp.float32) * 0.1
        b = jax.random.normal(kb, (cout,), dtype=jnp.float32) * 0.1
        out = same_pad_conv(x, w, b, kernel_size=K, dilation=dilation,
                            groups=groups, tile_l=tile_l)
        out = jax.block_until_ready(out)
        ref = _reference_same_pad_conv(x, w, b, kernel_size=K,
                                       dilation=dilation, groups=groups)
        assert out.shape == ref.shape == (B, cout, L), (out.shape, ref.shape)
        err = float(jnp.max(jnp.abs(out - ref)))
        assert jnp.allclose(out, ref, atol=atol, rtol=rtol), (cid, err)

    # Primary module config: odd receptive field, single group (VPU path).
    run_case(0, B=2, L=16, cin=4, cout=4, K=3, dilation=1, groups=1)
    # Even receptive field (exercises torch's trailing-element trim) + groups.
    run_case(1, B=2, L=40, cin=6, cout=8, K=4, dilation=1, groups=2)
    # Multi-tile L path: halo blocks crossing tiles, ragged tail, B=1.
    run_case(2, B=1, L=300, cin=4, cout=4, K=3, dilation=2, groups=1, tile_l=128)
    # Wide-channel config: folded-tap MXU matmul path (looser tolerance vs the
    # HIGHEST-precision f32 reference to allow for MXU pass decomposition).
    run_case(3, B=2, L=256, cin=64, cout=64, K=3, dilation=1, groups=1,
             atol=2e-2, rtol=2e-2)

    print("KERNEL_OK")
</pallas_src>

<mosaic_0001>
module attributes {stable_mosaic.version = 11 : i64} {
  func.func @_samepad_conv1d_kernel(%arg0: i32, %arg1: i32, %arg2: memref<1x4x128xf32, #tpu.memory_space<vmem>>, %arg3: memref<1x4x128xf32, #tpu.memory_space<vmem>>, %arg4: memref<3x4x4xf32, #tpu.memory_space<vmem>>, %arg5: memref<4x1xf32, #tpu.memory_space<vmem>>, %arg6: memref<1x4x128xf32, #tpu.memory_space<vmem>>) attributes {dimension_semantics = [#tpu.dimension_semantics<parallel>, #tpu.dimension_semantics<parallel>], iteration_bounds = array<i64: 2, 1>, scalar_prefetch = 0 : i64, scratch_operands = 0 : i64, tpu.core_type = #tpu.core_type<tc>, window_params = [{transform_indices = @transform_0, window_bounds = array<i64: 1, 4, 128>}, {transform_indices = @transform_1, window_bounds = array<i64: 1, 4, 128>}, {pipeline_mode = #tpu.pipeline_mode<synchronous>, transform_indices = @transform_2, window_bounds = array<i64: 3, 4, 4>}, {pipeline_mode = #tpu.pipeline_mode<synchronous>, transform_indices = @transform_3, window_bounds = array<i64: 4, 1>}, {transform_indices = @transform_4, window_bounds = array<i64: 1, 4, 128>}]} {
    %c0 = arith.constant 0 : index
    %c0_0 = arith.constant 0 : index
    %c0_1 = arith.constant 0 : index
    %0 = vector.load %arg2[%c0, %c0_0, %c0_1] : memref<1x4x128xf32, #tpu.memory_space<vmem>>, vector<1x4x128xf32>
    %1 = vector.shape_cast %0 : vector<1x4x128xf32> to vector<4x128xf32>
    %c0_2 = arith.constant 0 : index
    %c0_3 = arith.constant 0 : index
    %c0_4 = arith.constant 0 : index
    %2 = vector.load %arg3[%c0_2, %c0_3, %c0_4] : memref<1x4x128xf32, #tpu.memory_space<vmem>>, vector<1x4x128xf32>
    %3 = vector.shape_cast %2 : vector<1x4x128xf32> to vector<4x128xf32>
    %4 = tpu.concatenate %1, %3 in 1 : vector<4x128xf32>, vector<4x128xf32> -> vector<4x256xf32>
    %c0_5 = arith.constant 0 : index
    %c0_6 = arith.constant 0 : index
    %5 = vector.load %arg5[%c0_5, %c0_6] : memref<4x1xf32, #tpu.memory_space<vmem>>, vector<4x1xf32>
    %6 = vector.shape_cast %5 : vector<4x1xf32> to vector<4x1xf32>
    %7 = vector.broadcast %6 : vector<4x1xf32> to vector<4x128xf32>
    %8 = vector.extract_strided_slice %4 {offsets = [0, 0], sizes = [4, 128], strides = [1, 1]} : vector<4x256xf32> to vector<4x128xf32>
    %c0_7 = arith.constant 0 : index
    %c0_8 = arith.constant 0 : index
    %c0_9 = arith.constant 0 : index
    %9 = vector.load %arg4[%c0_7, %c0_8, %c0_9] : memref<3x4x4xf32, #tpu.memory_space<vmem>>, vector<1x4x1xf32>
    %10 = vector.shape_cast %9 : vector<1x4x1xf32> to vector<4x1xf32>
    %11 = vector.extract_strided_slice %8 {offsets = [0, 0], sizes = [1, 128], strides = [1, 1]} : vector<4x128xf32> to vector<1x128xf32>
    %12 = vector.broadcast %10 : vector<4x1xf32> to vector<4x128xf32>
    %13 = vector.broadcast %11 : vector<1x128xf32> to vector<4x128xf32>
    %14 = arith.mulf %12, %13 : vector<4x128xf32>
    %15 = arith.addf %7, %14 : vector<4x128xf32>
    %c0_10 = arith.constant 0 : index
    %c0_11 = arith.constant 0 : index
    %c1 = arith.constant 1 : index
    %16 = vector.load %arg4[%c0_10, %c0_11, %c1] : memref<3x4x4xf32, #tpu.memory_space<vmem>>, vector<1x4x1xf32>
    %17 = vector.shape_cast %16 : vector<1x4x1xf32> to vector<4x1xf32>
    %18 = vector.extract_strided_slice %8 {offsets = [1, 0], sizes = [1, 128], strides = [1, 1]} : vector<4x128xf32> to vector<1x128xf32>
    %19 = vector.broadcast %17 : vector<4x1xf32> to vector<4x128xf32>
    %20 = vector.broadcast %18 : vector<1x128xf32> to vector<4x128xf32>
    %21 = arith.mulf %19, %20 : vector<4x128xf32>
    %22 = arith.addf %15, %21 : vector<4x128xf32>
    %c0_12 = arith.constant 0 : index
    %c0_13 = arith.constant 0 : index
    %c2 = arith.constant 2 : index
    %23 = vector.load %arg4[%c0_12, %c0_13, %c2] : memref<3x4x4xf32, #tpu.memory_space<vmem>>, vector<1x4x1xf32>
    %24 = vector.shape_cast %23 : vector<1x4x1xf32> to vector<4x1xf32>
    %25 = vector.extract_strided_slice %8 {offsets = [2, 0], sizes = [1, 128], strides = [1, 1]} : vector<4x128xf32> to vector<1x128xf32>
    %26 = vector.broadcast %24 : vector<4x1xf32> to vector<4x128xf32>
    %27 = vector.broadcast %25 : vector<1x128xf32> to vector<4x128xf32>
    %28 = arith.mulf %26, %27 : vector<4x128xf32>
    %29 = arith.addf %22, %28 : vector<4x128xf32>
    %c0_14 = arith.constant 0 : index
    %c0_15 = arith.constant 0 : index
    %c3 = arith.constant 3 : index
    %30 = vector.load %arg4[%c0_14, %c0_15, %c3] : memref<3x4x4xf32, #tpu.memory_space<vmem>>, vector<1x4x1xf32>
    %31 = vector.shape_cast %30 : vector<1x4x1xf32> to vector<4x1xf32>
    %32 = vector.extract_strided_slice %8 {offsets = [3, 0], sizes = [1, 128], strides = [1, 1]} : vector<4x128xf32> to vector<1x128xf32>
    %33 = vector.broadcast %31 : vector<4x1xf32> to vector<4x128xf32>
    %34 = vector.broadcast %32 : vector<1x128xf32> to vector<4x128xf32>
    %35 = arith.mulf %33, %34 : vector<4x128xf32>
    %36 = arith.addf %29, %35 : vector<4x128xf32>
    %37 = vector.extract_strided_slice %4 {offsets = [0, 1], sizes = [4, 128], strides = [1, 1]} : vector<4x256xf32> to vector<4x128xf32>
    %c1_16 = arith.constant 1 : index
    %c0_17 = arith.constant 0 : index
    %c0_18 = arith.constant 0 : index
    %38 = vector.load %arg4[%c1_16, %c0_17, %c0_18] : memref<3x4x4xf32, #tpu.memory_space<vmem>>, vector<1x4x1xf32>
    %39 = vector.shape_cast %38 : vector<1x4x1xf32> to vector<4x1xf32>
    %40 = vector.extract_strided_slice %37 {offsets = [0, 0], sizes = [1, 128], strides = [1, 1]} : vector<4x128xf32> to vector<1x128xf32>
    %41 = vector.broadcast %39 : vector<4x1xf32> to vector<4x128xf32>
    %42 = vector.broadcast %40 : vector<1x128xf32> to vector<4x128xf32>
    %43 = arith.mulf %41, %42 : vector<4x128xf32>
    %44 = arith.addf %36, %43 : vector<4x128xf32>
    %c1_19 = arith.constant 1 : index
    %c0_20 = arith.constant 0 : index
    %c1_21 = arith.constant 1 : index
    %45 = vector.load %arg4[%c1_19, %c0_20, %c1_21] : memref<3x4x4xf32, #tpu.memory_space<vmem>>, vector<1x4x1xf32>
    %46 = vector.shape_cast %45 : vector<1x4x1xf32> to vector<4x1xf32>
    %47 = vector.extract_strided_slice %37 {offsets = [1, 0], sizes = [1, 128], strides = [1, 1]} : vector<4x128xf32> to vector<1x128xf32>
    %48 = vector.broadcast %46 : vector<4x1xf32> to vector<4x128xf32>
    %49 = vector.broadcast %47 : vector<1x128xf32> to vector<4x128xf32>
    %50 = arith.mulf %48, %49 : vector<4x128xf32>
    %51 = arith.addf %44, %50 : vector<4x128xf32>
    %c1_22 = arith.constant 1 : index
    %c0_23 = arith.constant 0 : index
    %c2_24 = arith.constant 2 : index
    %52 = vector.load %arg4[%c1_22, %c0_23, %c2_24] : memref<3x4x4xf32, #tpu.memory_space<vmem>>, vector<1x4x1xf32>
    %53 = vector.shape_cast %52 : vector<1x4x1xf32> to vector<4x1xf32>
    %54 = vector.extract_strided_slice %37 {offsets = [2, 0], sizes = [1, 128], strides = [1, 1]} : vector<4x128xf32> to vector<1x128xf32>
    %55 = vector.broadcast %53 : vector<4x1xf32> to vector<4x128xf32>
    %56 = vector.broadcast %54 : vector<1x128xf32> to vector<4x128xf32>
    %57 = arith.mulf %55, %56 : vector<4x128xf32>
    %58 = arith.addf %51, %57 : vector<4x128xf32>
    %c1_25 = arith.constant 1 : index
    %c0_26 = arith.constant 0 : index
    %c3_27 = arith.constant 3 : index
    %59 = vector.load %arg4[%c1_25, %c0_26, %c3_27] : memref<3x4x4xf32, #tpu.memory_space<vmem>>, vector<1x4x1xf32>
    %60 = vector.shape_cast %59 : vector<1x4x1xf32> to vector<4x1xf32>
    %61 = vector.extract_strided_slice %37 {offsets = [3, 0], sizes = [1, 128], strides = [1, 1]} : vector<4x128xf32> to vector<1x128xf32>
    %62 = vector.broadcast %60 : vector<4x1xf32> to vector<4x128xf32>
    %63 = vector.broadcast %61 : vector<1x128xf32> to vector<4x128xf32>
    %64 = arith.mulf %62, %63 : vector<4x128xf32>
    %65 = arith.addf %58, %64 : vector<4x128xf32>
    %66 = vector.extract_strided_slice %4 {offsets = [0, 2], sizes = [4, 128], strides = [1, 1]} : vector<4x256xf32> to vector<4x128xf32>
    %c2_28 = arith.constant 2 : index
    %c0_29 = arith.constant 0 : index
    %c0_30 = arith.constant 0 : index
    %67 = vector.load %arg4[%c2_28, %c0_29, %c0_30] : memref<3x4x4xf32, #tpu.memory_space<vmem>>, vector<1x4x1xf32>
    %68 = vector.shape_cast %67 : vector<1x4x1xf32> to vector<4x1xf32>
    %69 = vector.extract_strided_slice %66 {offsets = [0, 0], sizes = [1, 128], strides = [1, 1]} : vector<4x128xf32> to vector<1x128xf32>
    %70 = vector.broadcast %68 : vector<4x1xf32> to vector<4x128xf32>
    %71 = vector.broadcast %69 : vector<1x128xf32> to vector<4x128xf32>
    %72 = arith.mulf %70, %71 : vector<4x128xf32>
    %73 = arith.addf %65, %72 : vector<4x128xf32>
    %c2_31 = arith.constant 2 : index
    %c0_32 = arith.constant 0 : index
    %c1_33 = arith.constant 1 : index
    %74 = vector.load %arg4[%c2_31, %c0_32, %c1_33] : memref<3x4x4xf32, #tpu.memory_space<vmem>>, vector<1x4x1xf32>
    %75 = vector.shape_cast %74 : vector<1x4x1xf32> to vector<4x1xf32>
    %76 = vector.extract_strided_slice %66 {offsets = [1, 0], sizes = [1, 128], strides = [1, 1]} : vector<4x128xf32> to vector<1x128xf32>
    %77 = vector.broadcast %75 : vector<4x1xf32> to vector<4x128xf32>
    %78 = vector.broadcast %76 : vector<1x128xf32> to vector<4x128xf32>
    %79 = arith.mulf %77, %78 : vector<4x128xf32>
    %80 = arith.addf %73, %79 : vector<4x128xf32>
    %c2_34 = arith.constant 2 : index
    %c0_35 = arith.constant 0 : index
    %c2_36 = arith.constant 2 : index
    %81 = vector.load %arg4[%c2_34, %c0_35, %c2_36] : memref<3x4x4xf32, #tpu.memory_space<vmem>>, vector<1x4x1xf32>
    %82 = vector.shape_cast %81 : vector<1x4x1xf32> to vector<4x1xf32>
    %83 = vector.extract_strided_slice %66 {offsets = [2, 0], sizes = [1, 128], strides = [1, 1]} : vector<4x128xf32> to vector<1x128xf32>
    %84 = vector.broadcast %82 : vector<4x1xf32> to vector<4x128xf32>
    %85 = vector.broadcast %83 : vector<1x128xf32> to vector<4x128xf32>
    %86 = arith.mulf %84, %85 : vector<4x128xf32>
    %87 = arith.addf %80, %86 : vector<4x128xf32>
    %c2_37 = arith.constant 2 : index
    %c0_38 = arith.constant 0 : index
    %c3_39 = arith.constant 3 : index
    %88 = vector.load %arg4[%c2_37, %c0_38, %c3_39] : memref<3x4x4xf32, #tpu.memory_space<vmem>>, vector<1x4x1xf32>
    %89 = vector.shape_cast %88 : vector<1x4x1xf32> to vector<4x1xf32>
    %90 = vector.extract_strided_slice %66 {offsets = [3, 0], sizes = [1, 128], strides = [1, 1]} : vector<4x128xf32> to vector<1x128xf32>
    %91 = vector.broadcast %89 : vector<4x1xf32> to vector<4x128xf32>
    %92 = vector.broadcast %90 : vector<1x128xf32> to vector<4x128xf32>
    %93 = arith.mulf %91, %92 : vector<4x128xf32>
    %94 = arith.addf %87, %93 : vector<4x128xf32>
    %c0_40 = arith.constant 0 : index
    %c0_41 = arith.constant 0 : index
    %c0_42 = arith.constant 0 : index
    %95 = vector.load %arg6[%c0_40, %c0_41, %c0_42] : memref<1x4x128xf32, #tpu.memory_space<vmem>>, vector<1x4x128xf32>
    %96 = vector.shape_cast %95 : vector<1x4x128xf32> to vector<4x128xf32>
    %97 = vector.shape_cast %94 : vector<4x128xf32> to vector<1x4x128xf32>
    tpu.vector_store %arg6[%c0_40, %c0_41, %c0_42], %97 {strides = array<i32>} : memref<1x4x128xf32, #tpu.memory_space<vmem>>, vector<1x4x128xf32>,
    return
  }
  func.func @transform_0(%arg0: i32, %arg1: i32) -> (i32, i32, i32) {
    %c0_i32 = arith.constant 0 : i32
    %c0_i32_0 = arith.constant 0 : i32
    return %arg0, %c0_i32, %arg1 : i32, i32, i32
  }
  func.func @transform_1(%arg0: i32, %arg1: i32) -> (i32, i32, i32) {
    %c1_i32 = arith.constant 1 : i32
    %0 = arith.addi %arg1, %c1_i32 : i32
    %c1_i32_0 = arith.constant 1 : i32
    %1 = arith.muli %0, %c1_i32_0 : i32
    %c0_i32 = arith.constant 0 : i32
    %c0_i32_1 = arith.constant 0 : i32
    return %arg0, %c0_i32, %1 : i32, i32, i32
  }
  func.func @transform_2(%arg0: i32, %arg1: i32) -> (i32, i32, i32) {
    %c0_i32 = arith.constant 0 : i32
    %c0_i32_0 = arith.constant 0 : i32
    %c0_i32_1 = arith.constant 0 : i32
    %c0_i32_2 = arith.constant 0 : i32
    return %c0_i32, %c0_i32_0, %c0_i32_1 : i32, i32, i32
  }
  func.func @transform_3(%arg0: i32, %arg1: i32) -> (i32, i32) {
    %c0_i32 = arith.constant 0 : i32
    %c0_i32_0 = arith.constant 0 : i32
    %c0_i32_1 = arith.constant 0 : i32
    return %c0_i32, %c0_i32_0 : i32, i32
  }
  func.func @transform_4(%arg0: i32, %arg1: i32) -> (i32, i32, i32) {
    %c0_i32 = arith.constant 0 : i32
    %c0_i32_0 = arith.constant 0 : i32
    return %arg0, %c0_i32, %arg1 : i32, i32, i32
  }
}

</mosaic_0001>

<bundles_post_ra>
// kernel: tpu_custom_call.1
= control target key start
LH: loop header
LB: loop body
LE: loop exit
PB: predicated region body
PF: predicated region fallthrough
CT: control target
= control target key end

     0   :  { %9 = vsyncpa [#allocation3], 0  ;;  %s1127_s0 = inlined_call_operand.hbm [shape: f32[2,4,256], index: 0, kind: input, shape index: {}]   ;;  %s1128_s1 = inlined_call_operand.hbm [shape: f32[2,4,256], index: 1, kind: input, shape index: {}]   ;;  %s1129_s2 = inlined_call_operand.vmem [shape: f32[3,4,4], index: 2, kind: input, shape index: {}]   ;;  %s1130_s3 = inlined_call_operand.vmem [shape: f32[4,1], index: 3, kind: input, shape index: {}]   ;;  %s1131_s4 = inlined_call_operand.hbm [shape: f32[2,4,16], index: 4, kind: output, shape index: {}]  }
   0x1   :  { %11 = vsyncpa [#allocation3 + $0x1], 0 }
   0x2   :  { %12 = vsyncpa [#allocation6], 0 }
   0x3   :  { %14 = vsyncpa [#allocation6 + $0x1], 0 }
   0x4   :  { %15 = vsyncpa [#allocation4], 0 }
   0x5   :  { %17 = vsyncpa [#allocation4 + $0x1], 0  ;;  %s883_s15 = smov 0   ;;  %s885_s16 = smov 0  }
   0x6   :  { %s887_s17 = smov 0   ;;  %s889_s18 = smov 0  }
   0x7   :  { %s891_s19 = smov 0   ;;  %s893_s20 = smov 0  }
   0x8 LB: > { %s593_s21 = sadd.s32 4294967295, %s847_s20   ;;  %s594_s22 = sadd.s32 4294967294, %s847_s20   ;;  %s847_s20 = sphi %s893_s20, %s23_s20   ;;  %s843_s19 = sphi %s891_s19, %s1151_s19   ;;  %s839_s18 = sphi %s889_s18, %s1150_s18   ;;  %s835_s17 = sphi %s887_s17, %s1149_s17   ;;  %s831_s16 = sphi %s885_s16, %s1148_s16   ;;  %s827_s15 = sphi %s883_s15, %s1147_s15  }
   0x9   : > { %s35_s23 = sadd.s32 1, %s843_s19  ;;  %s44_s24 = sadd.s32 1, %s835_s17 }
   0xa   : > { %p37_p0 = scmp.ge.s32.totalorder %s35_s23, 2  ;;  %p51_p1 = scmp.ne.s32.totalorder %s835_s17, %s831_s16 }
   0xb   : > { %p52_p2 = scmp.eq.s32.totalorder %s847_s20, 0  ;;  %p57_p3 = scmp.ne.s32.totalorder %s831_s16, %s827_s15 }
   0xc   : > { %s1153_s23 = smov (%p37_p0, %s35_s23), 0  ;;  %p58_p5 = scmp.eq.s32.totalorder %s593_s21, 0 }
   0xd   : > { %p924_p4 = por %p52_p2, %p51_p1  ;;  %s39_s26 = ssub.s32 %s843_s19, %s1153_s23 }
   0xe   : > { %p155_p6 = scmp.eq.s32.totalorder %s593_s21, 1  ;;  %p42_p7 = scmp.eq.s32.totalorder %s39_s26, 0 }
   0xf   : > { %p930_p8 = por %p58_p5, %p57_p3  ;;  %p161_p10 = scmp.eq.s32.totalorder %s594_s22, 1 }
  0x10   : > { %p934_p9 = por %p155_p6, %p51_p1  ;;  %p632_p13 = scmp.lt.s32.totalorder %s847_s20, 2 }
  0x11   : > { %s1135_s27 = scalar_select %p930_p8, 1, 0 }
  0x12   : > { %s1136_s28 = scalar_select %p934_p9, 1, 0 }
  0x13   : > { %s939_s29 = scalar_select %p42_p7, %s835_s17, %s44_s24  }
  0x14   : > { %p941_p11 = por %p161_p10, %p57_p3  ;;  %s948_s5 = sand.u32 1, %s835_s17  }
  0x15   : > { %s597_s6 = sshll.u32 %s948_s5, 2  ;;  %s613_s7 = sshll.u32 %s843_s19, 7 }
  0x16   : > { %s1137_s30 = scalar_select %p941_p11, 1, 0 }
  0x17   : > { %s957_s10 = scalar_lea.hbm %s1127_s0, %s613_s7  ;;  %s191_s11 = scalar_lea.vmem [#allocation2], %s597_s6 }
  0x18   : > { %s200_s12 = sshll.u32 %s191_s11, 4  ;;  %p965_p0 = pnand %p632_p13, %p924_p4  ;;  %s961_s12 = int_to_ptr.vmem [resolvable:$true] %s200_s12 }
  0x19   : > { %s188_s14 = scalar_lea.sflag [#allocation3], %s948_s5  ;;  %s700_s21 = scalar_lea.hbm %s957_s10, 64 }
  0x1a   : > { %p701_p3 = scmp.ne.s32.totalorder %s957_s10, %s700_s21  ;;  %p702_p5 = pneg %p965_p0 }
  0x1b   : > { %s705_s25 = scalar_lea.hbm %s1127_s0, 256  ;;  %p706_p4 = scmp.lt.u32.totalorder %s957_s10, %s1127_s0 }
  0x1c   : > { %p703_p6 = pnand %p702_p5, %p701_p3  ;;  %p707_p10 = scmp.lt.u32.totalorder %s705_s25, %s700_s21 }
  0x1d   : > { %p709_p12 = scmp.lt.u32.totalorder %s700_s21, %s957_s10 }
  0x1e   : > { %p704_p7 = pneg %p703_p6  ;;  %p708_p13 = por %p707_p10, %p706_p4 }
  0x20   : > { %p710_p1 = por %p709_p12, %p708_p13 }
  0x22   : > { %p711_p2 = pnand %p710_p1, %p704_p7 }
  0x24   : > { %714 = shalt.err (!%p711_p2)
}
  0x25   : > { %s715_s9 = scalar_lea.vmem %s961_s12, 64  ;;  %s849_s11 = smov [#allocation2]  }
  0x26   : > { %p716_p3 = scmp.ne.s32.totalorder %s961_s12, %s715_s9  ;;  %s720_s22 = sshll.u32 %s849_s11, 4  ;;  %s721_s22 = int_to_ptr.vmem [resolvable:$false] %s720_s22 }
  0x27   : > { %s722_s24 = scalar_lea.vmem %s721_s22, 128  ;;  %p723_p9 = scmp.lt.s32.totalorder %s961_s12, %s721_s22 }
  0x28   : > { %p718_p6 = pnand %p716_p3, %p702_p5  ;;  %p724_p4 = scmp.lt.s32.totalorder %s722_s24, %s715_s9 }
  0x2a   : > { %p719_p11 = pneg %p718_p6  ;;  %p725_p10 = por %p724_p4, %p723_p9 }
  0x2c   : > { %p726_p12 = pnand %p725_p10, %p719_p11 }
  0x2e   : > { %729 = shalt.err (!%p726_p12)
}
  0x2f   : > { %624 = dma.hbm_to_vmem [thread:$0]  (!%p965_p0), %s957_s10, 64, %s961_s12, %s188_s14  }
  0x30   : > { %p1139_p1 = scmp.lt.s32.totalorder %s847_s20, 3  ;;  %p1140_p2 = scmp.ge.s32.totalorder %s847_s20, 1 }
  0x31   : > { %s526_s8 = scalar_lea.hbm %s1128_s1, %s613_s7  ;;  %s211_s9 = scalar_lea.vmem [#allocation5], %s597_s6 }
  0x32   : > { %p1001_p7 = pnand %p1140_p2, %p1139_p1  ;;  %s221_s11 = sshll.u32 %s211_s9, 4  ;;  %s222_s11 = int_to_ptr.vmem [resolvable:$true] %s221_s11 }
  0x33   : > { %s1012_s22 = scalar_lea.hbm %s526_s8, 64  ;;  %s208_s10 = scalar_lea.sflag [#allocation6], %s948_s5 }
  0x34   : > { %s1141_s21 = scalar_select %p1001_p7, 1, 0 }
  0x35   : > { %s760_s12 = scalar_lea.hbm %s526_s8, 128  ;;  %s735_s7 = scalar_lea.hbm %s1128_s1, 256 }
  0x36   : > { %p731_p9 = scmp.ne.s32.totalorder %s1012_s22, %s760_s12  ;;  %p736_p3 = scmp.lt.u32.totalorder %s1012_s22, %s1128_s1 }
  0x37   : > { %p737_p6 = scmp.lt.u32.totalorder %s735_s7, %s760_s12  ;;  %p739_p10 = scmp.lt.u32.totalorder %s760_s12, %s1012_s22 }
  0x38   : > { %p733_p11 = pnand %p731_p9, %p702_p5 }
  0x39   : > { %p738_p4 = por %p737_p6, %p736_p3 }
  0x3a   : > { %p734_p13 = pneg %p733_p11 }
  0x3b   : > { %p740_p12 = por %p739_p10, %p738_p4 }
  0x3d   : > { %p741_p1 = pnand %p740_p12, %p734_p13 }
  0x3f   : > { %744 = shalt.err (!%p741_p1)
}
  0x40   : > { %s745_s5 = scalar_lea.vmem %s222_s11, 64  ;;  %s850_s26 = smov [#allocation5]  }
  0x41   : > { %p746_p2 = scmp.ne.s32.totalorder %s222_s11, %s745_s5  ;;  %s750_s8 = sshll.u32 %s850_s26, 4  ;;  %s751_s8 = int_to_ptr.vmem [resolvable:$false] %s750_s8 }
  0x42   : > { %s752_s9 = scalar_lea.vmem %s751_s8, 128  ;;  %p753_p8 = scmp.lt.s32.totalorder %s222_s11, %s751_s8 }
  0x43   : > { %p748_p9 = pnand %p746_p2, %p702_p5  ;;  %p754_p7 = scmp.lt.s32.totalorder %s752_s9, %s745_s5 }
  0x45   : > { %p749_p11 = pneg %p748_p9  ;;  %p755_p3 = por %p754_p7, %p753_p8 }
  0x47   : > { %p756_p6 = pnand %p755_p3, %p749_p11 }
  0x49   : > { %759 = shalt.err (!%p756_p6)
}
  0x4a   : > { %627 = dma.hbm_to_vmem [thread:$0]  (!%p965_p0), %s1012_s22, 64, %s222_s11, %s208_s10  }
  0x4b   : > { %p1142_p13 = scmp.ne.s32.totalorder %s1141_s21, 0 }
  0x4c   : > { %s1036_s12 = sand.u32 (!%p1142_p13), 1, %s831_s16   ;;  %p1143_p8 = scmp.ne.s32.totalorder (!%p1142_p13), %s1135_s27, 0 }
  0x4d   : > { %230 = sbr.rel (%p1142_p13) target bundleno = 380 (0x17c), region = 36  ;;  %s1039_s14 = sshll.u32 (!%p1142_p13), %s1036_s12, 2 }
  0x4e   : > { %s233_s24 = scalar_lea.sflag (!%p1142_p13), [#allocation3], %s1036_s12  ;;  %s236_s7 = scalar_lea.vmem (!%p1142_p13), [#allocation2], %s1039_s14 }
  0x54   : > { %814 = dma.done.wait (%p1143_p8), %s233_s24, 64  }
  0x55   : > { %816 = vsyncadd (%p1143_p8), %s233_s24, 4294967232  ;;  %s242_s13 = scalar_lea.sflag [#allocation6], %s1036_s12  ;;  %s245_s21 = scalar_lea.vmem [#allocation5], %s1039_s14 }
  0x56   : > { %818 = dma.done.wait (%p1143_p8), %s242_s13, 64  }
  0x57   : > { %820 = vsyncadd (%p1143_p8), %s242_s13, 4294967232  ;;  %v851_v0 = vmov 0   ;;  %v852_v1 = vmov 2   ;;  %v607_v2 = vld [vmem:[%s1129_s2 + $0x4] sm:$0xf]  ;;  %v853_v3 = vmov 1   ;;  %v290_v8 = vlaneseq }
  0x58   : > { %688 = vset.pattern.permute.xlu0 %v851_v0  ;;  %690 = vset.pattern.permute.xlu1 %v852_v1  ;;  %v854_v4 = vmov 3   ;;  %v608_v5 = vld [vmem:[%s1129_s2 + $0x8] sm:$0xf]  ;;  %v284_v6 = vld [vmem:[%s1129_s2] sm:$0xf]  ;;  %s855_s8 = smov 127  }
  0x59   : > { %330 = vperm.xlu0 %688, %v607_v2   ;;  %369 = vperm.xlu1 %690, %v607_v2   ;;  %v278_v7 = vld [vmem:[%s1130_s3] sm:$0xf]  ;;  %v291_v9 = vshrl.u32 %v290_v8, 7  ;;  %v277_v12 = vld [vmem:[%s245_s21] sm:$0xf]  ;;  %s856_s9 = smov 126  }
  0x5a   : > { %v276_v11 = vld [vmem:[%s236_s7] sm:$0xf]  ;;  %vm345_vm0 = vcmask 1039360   ;;  %vm421_vm1 = vcmask 1031168   ;;  %s610_s24 = sshll.u32 %s839_s18, 6  ;;  %s274_s7 = scalar_lea.vmem [#allocation7], %s1039_s14 }
  0x5b   : > { %v292_v10 = vsub.s32 0, %v291_v9  ;;  %v302_v15 = vsub.s32 1, %v291_v9  ;;  %v312_v22 = vsub.s32 2, %v291_v9  ;;  %v322_v23 = vsub.s32 3, %v291_v9  ;;  %s486_s13 = sshll.u32 %s274_s7, 4  ;;  %s1078_s22 = scalar_lea.hbm %s1131_s4, %s610_s24  ;;  %s1080_s13 = int_to_ptr.vmem [resolvable:$true] %s486_s13 }
  0x5c   : > { %s472_s18 = scalar_lea.sflag [#allocation4], %s1036_s12  ;;  %s761_s14 = scalar_lea.vmem %s1080_s13, 64 }
  0x5d   : > { %689 = vset.pattern.permute.xlu0 %v853_v3  ;;  %691 = vset.pattern.permute.xlu1 %v854_v4  ;;  %v293_v13 = vrot.slane %v276_v11, %v292_v10  ;;  %v336_v14 = vrot.slane %v277_v12, %v292_v10  ;;  %v303_v20 = vrot.slane %v276_v11, %v302_v15  ;;  %p762_p0 = scmp.ne.s32.totalorder %s1080_s13, %s761_s14  ;;  %p1144_p5 = scmp.ne.s32.totalorder %s1136_s28, 0 }
  0x5e   : > { %350 = vperm.xlu0 %689, %v607_v2   ;;  %388 = vperm.xlu1 %691, %v607_v2   ;;  %v356_v21 = vrot.slane %v277_v12, %v302_v15  ;;  %v313_v27 = vrot.slane %v276_v11, %v312_v22  ;;  %v375_v28 = vrot.slane %v277_v12, %v312_v22  ;;  %s857_s10 = smov [#allocation7]  }
  0x5f   : > { %v323_v30 = vrot.slane %v276_v11, %v322_v23  ;;  %v394_v31 = vrot.slane %v277_v12, %v322_v23  ;;  %p763_p7 = pnand %p762_p0, %p1144_p5  ;;  %s765_s25 = sshll.u32 %s857_s10, 4  ;;  %s766_s25 = int_to_ptr.vmem [resolvable:$false] %s765_s25 }
  0x60   : > { %s767_s27 = scalar_lea.vmem %s766_s25, 128  ;;  %p768_p10 = scmp.lt.s32.totalorder %s1080_s13, %s766_s25 }
  0x61   : > { %p764_p4 = pneg %p763_p7  ;;  %p769_p12 = scmp.lt.s32.totalorder %s767_s27, %s761_s14 }
  0x62   : > { %426 = vperm.xlu0 %689, %v608_v5   ;;  %692 = vset.pattern.permute.xlu1 %v851_v0 }
  0x63   : > { %410 = vperm.xlu1 %692, %v608_v5   ;;  %p770_p1 = por %p769_p12, %p768_p10 }
  0x65   : > { %p771_p2 = pnand %p770_p1, %p764_p4 }
  0x66   : > { %694 = vset.pattern.permute.xlu0 %v854_v4 }
  0x67   : > { %693 = vset.pattern.permute.xlu1 %v852_v1  ;;  %456 = vperm.xlu0 %694, %v608_v5  }
  0x68   : > { %441 = vperm.xlu1 %693, %v608_v5  }
  0x6b   : > { %696 = vset.pattern.permute.xlu0 %v853_v3 }
  0x6c   : > { %695 = vset.pattern.permute.xlu1 %v851_v0  ;;  %297 = vperm.xlu0 %696, %v284_v6  }
  0x6d   : > { %287 = vperm.xlu1 %695, %v284_v6  }
  0x70   : > { %699 = vset.pattern.permute.xlu0 %v854_v4 }
  0x71   : > { %281 = vperm.xlu1 %695, %v278_v7  }
  0x75   : > { %697 = vset.pattern.permute.xlu1 %v852_v1 }
  0x76   : > { %307 = vperm.xlu1 %697, %v284_v6  }
  0x7a   : > { %698 = vset.pattern.permute.xlu1 %v854_v4 }
  0x7b   : > { %317 = vperm.xlu1 %698, %v284_v6  }
  0xd8   : > { %v331_v16 = vpop.permute.xlu0 %330  ;;  %v370_v17 = vpop.permute.xlu1 %369 }
  0xd9   : > { %v337_v18 = vmul.f32 %v331_v16, %v293_v13  ;;  %v338_v19 = vmul.f32 %v336_v14, %v331_v16  ;;  %v376_v32 = vmul.f32 %v370_v17, %v313_v27  ;;  %v377_v33 = vmul.f32 %v375_v28, %v370_v17 }
  0xdb   : > { %343 = vrot.lane.b32.xlu1 %v338_v19, %s855_s8  ;;  %341 = vrot.lane.b32.xlu0 %v337_v18, %s855_s8 }
  0xdd   : > { %v351_v24 = vpop.permute.xlu0 %350  ;;  %v389_v29 = vpop.permute.xlu1 %388 }
  0xde   : > { %v357_v25 = vmul.f32 %v351_v24, %v303_v20  ;;  %v358_v26 = vmul.f32 %v356_v21, %v351_v24  ;;  %v395_v35 = vmul.f32 %v389_v29, %v323_v30  ;;  %v396_v36 = vmul.f32 %v394_v31, %v389_v29 }
  0xe0   : > { %363 = vrot.lane.b32.xlu1 %v358_v26, %s855_s8  ;;  %361 = vrot.lane.b32.xlu0 %v357_v25, %s855_s8 }
  0xe1   : > { %v427_v34 = vpop.permute.xlu0 %426 }
  0xe2   : > { %v411_v37 = vpop.permute.xlu1 %410  ;;  %v429_v45 = vmul.f32 %v427_v34, %v303_v20  ;;  %v430_v46 = vmul.f32 %v427_v34, %v356_v21 }
  0xe3   : > { %v413_v38 = vmul.f32 %v411_v37, %v293_v13  ;;  %v414_v39 = vmul.f32 %v411_v37, %v336_v14 }
  0xe4   : > { %382 = vrot.lane.b32.xlu1 %v377_v33, %s855_s8  ;;  %380 = vrot.lane.b32.xlu0 %v376_v32, %s855_s8 }
  0xe6   : > { %v457_v41 = vpop.permute.xlu0 %456 }
  0xe7   : > { %v442_v40 = vpop.permute.xlu1 %441  ;;  %v459_v53 = vmul.f32 %v457_v41, %v323_v30  ;;  %v460_v54 = vmul.f32 %v457_v41, %v394_v31 }
  0xe8   : > { %401 = vrot.lane.b32.xlu1 %v396_v36, %s855_s8  ;;  %399 = vrot.lane.b32.xlu0 %v395_v35, %s855_s8  ;;  %v444_v48 = vmul.f32 %v442_v40, %v313_v27  ;;  %v445_v49 = vmul.f32 %v442_v40, %v375_v28 }
  0xeb   : > { %v298_v43 = vpop.permute.xlu0 %297 }
  0xec   : > { %419 = vrot.lane.b32.xlu1 %v414_v39, %s856_s9  ;;  %417 = vrot.lane.b32.xlu0 %v413_v38, %s856_s9  ;;  %v288_v42 = vpop.permute.xlu1 %287  ;;  %v304_v47 = vmul.f32 %v303_v20, %v298_v43 }
  0xed   : > { %v294_v44 = vmul.f32 %v293_v13, %v288_v42 }
  0xf0   : > { %435 = vrot.lane.b32.xlu1 %v430_v46, %s856_s9  ;;  %433 = vrot.lane.b32.xlu0 %v429_v45, %s856_s9  ;;  %v282_v50 = vpop.permute.xlu1 %281 }
  0xf1   : > { %v295_v51 = vadd.f32 %v294_v44, %v282_v50 }
  0xf3   : > { %v305_v52 = vadd.f32 %v304_v47, %v295_v51 }
  0xf4   : > { %450 = vrot.lane.b32.xlu1 %v445_v49, %s856_s9  ;;  %448 = vrot.lane.b32.xlu0 %v444_v48, %s856_s9 }
  0xf5   : > { %v308_v55 = vpop.permute.xlu1 %307 }
  0xf6   : > { %v314_v56 = vmul.f32 %v313_v27, %v308_v55 }
  0xf8   : > { %465 = vrot.lane.b32.xlu1 %v460_v54, %s856_s9  ;;  %463 = vrot.lane.b32.xlu0 %v459_v53, %s856_s9  ;;  %v315_v57 = vadd.f32 %v314_v56, %v305_v52 }
  0xfa   : > { %v318_v58 = vpop.permute.xlu1 %317 }
  0xfb   : > { %v324_v59 = vmul.f32 %v323_v30, %v318_v58 }
  0xfd   : > { %v325_v60 = vadd.f32 %v324_v59, %v315_v57 }
 0x14d   : > { %v344_v61 = vpop.permute.xlu1 %343  ;;  %v342_v62 = vpop.permute.xlu0 %341 }
 0x14e   : > { %v346_v5 = vsel %vm345_vm0, %v342_v62, %v344_v61 }
 0x14f   : > { %v348_v7 = vadd.f32 %v346_v5, %v325_v60 }
 0x152   : > { %v364_v63 = vpop.permute.xlu1 %363  ;;  %v362_v0 = vpop.permute.xlu0 %361 }
 0x153   : > { %v365_v6 = vsel %vm345_vm0, %v362_v0, %v364_v63 }
 0x154   : > { %v367_v11 = vadd.f32 %v365_v6, %v348_v7 }
 0x156   : > { %v383_v1 = vpop.permute.xlu1 %382  ;;  %v381_v2 = vpop.permute.xlu0 %380 }
 0x157   : > { %v384_v10 = vsel %vm345_vm0, %v381_v2, %v383_v1 }
 0x158   : > { %v386_v13 = vadd.f32 %v384_v10, %v367_v11 }
 0x15a   : > { %v402_v3 = vpop.permute.xlu1 %401  ;;  %v400_v4 = vpop.permute.xlu0 %399 }
 0x15b   : > { %v403_v12 = vsel %vm345_vm0, %v400_v4, %v402_v3 }
 0x15c   : > { %v405_v17 = vadd.f32 %v403_v12, %v386_v13 }
 0x15e   : > { %v420_v8 = vpop.permute.xlu1 %419  ;;  %v418_v9 = vpop.permute.xlu0 %417 }
 0x15f   : > { %v422_v16 = vsel %vm421_vm1, %v418_v9, %v420_v8 }
 0x160   : > { %v424_v19 = vadd.f32 %v422_v16, %v405_v17 }
 0x162   : > { %v436_v14 = vpop.permute.xlu1 %435  ;;  %v434_v15 = vpop.permute.xlu0 %433 }
 0x163   : > { %v437_v18 = vsel %vm421_vm1, %v434_v15, %v436_v14 }
 0x164   : > { %v439_v23 = vadd.f32 %v437_v18, %v424_v19 }
 0x166   : > { %v451_v20 = vpop.permute.xlu1 %450  ;;  %v449_v21 = vpop.permute.xlu0 %448 }
 0x167   : > { %v452_v22 = vsel %vm421_vm1, %v449_v21, %v451_v20 }
 0x168   : > { %v454_v24 = vadd.f32 %v452_v22, %v439_v23 }
 0x16a   : > { %v466_v25 = vpop.permute.xlu1 %465  ;;  %v464_v26 = vpop.permute.xlu0 %463 }
 0x16b   : > { %v467_v27 = vsel %vm421_vm1, %v464_v26, %v466_v25 }
 0x16c   : > { %v469_v28 = vadd.f32 %v467_v27, %v454_v24 }
 0x16e   : > { %470 = vst [vmem:[%s274_s7] sm:$0xf] %v469_v28 }
 0x16f   : > { %774 = shalt.err (!%p771_p2)
}
 0x170   : > { %s775_s12 = scalar_lea.hbm %s1078_s22, 64  ;;  %s779_s26 = scalar_lea.hbm %s1131_s4, 128 }
 0x171   : > { %p776_p9 = scmp.ne.s32.totalorder %s1078_s22, %s775_s12  ;;  %p780_p6 = scmp.lt.u32.totalorder %s1078_s22, %s1131_s4 }
 0x172   : > { %p781_p13 = scmp.lt.u32.totalorder %s779_s26, %s775_s12  ;;  %p783_p0 = scmp.lt.u32.totalorder %s775_s12, %s1078_s22 }
 0x173   : > { %p777_p11 = pnand %p776_p9, %p1144_p5 }
 0x174   : > { %p782_p8 = por %p781_p13, %p780_p6 }
 0x175   : > { %p778_p3 = pneg %p777_p11 }
 0x176   : > { %p784_p7 = por %p783_p0, %p782_p8 }
 0x178   : > { %p785_p4 = pnand %p784_p7, %p778_p3 }
 0x17a   : > { %788 = shalt.err (!%p785_p4)
}
 0x17b   : > { %619 = dma.vmem_to_hbm [thread:$0]  (%p1144_p5), %s1080_s13, 64, %s1078_s22, %s472_s18  }
 0x17c PF: > { %s498_s24 = sand.u32 1, %s827_s15   ;;  %p1145_p10 = scmp.ne.s32.totalorder %s1137_s30, 0 }
 0x17d   : > { %p1146_p12 = scmp.ge.s32.totalorder %s847_s20, 2  ;;  %s499_s7 = scalar_lea.sflag [#allocation4], %s498_s24 }
 0x17f   : > { %p629_p1 = pnand %p1146_p12, %p1145_p10 }
 0x181   : > { %822 = dma.done.wait (!%p629_p1), %s499_s7, 64  }
 0x182   : > { %824 = vsyncadd (!%p629_p1), %s499_s7, 4294967232  ;;  %s23_s20 = sadd.s32 1, %s847_s20   ;;  %s1147_s15 = smov %s831_s16 }
 0x183   : > { %p20_p2 = scmp.ge.s32.totalorder %s23_s20, 4   ;;  %s1148_s16 = smov %s835_s17 }
 0x184   : > { %s1149_s17 = smov %s939_s29  ;;  %s1150_s18 = smov %s843_s19 }
 0x185   : > { %s1151_s19 = smov %s1153_s23  ;;  %22 = sbr.rel (!%p20_p2) target bundleno = 8 (0x8), region = 96 }
 0x18c   :  { %504 = vsyncpa [#allocation3], 1 }
 0x18d   :  { %506 = vsyncpa [#allocation3 + $0x1], 1 }
 0x18e   :  { %507 = vsyncpa [#allocation6], 1 }
 0x18f   :  { %509 = vsyncpa [#allocation6 + $0x1], 1 }
 0x190   :  { %510 = vsyncpa [#allocation4], 1 }
 0x191   :  { %512 = vsyncpa [#allocation4 + $0x1], 1 }

</bundles_post_ra>
